<compile_context>
chip_gen: v7x
topology: tpu7x:2x2x1
jax: 0.10.0
libtpu: 0.0.40
codegen_flags: <defaults>
</compile_context>

<pallas_src>
import jax
import jax.numpy as jnp
from jax import lax
from jax.experimental import pallas as pl
from jax.experimental.pallas import tpu as pltpu


# ----------------------------- Pallas kernel ------------------------------ #
def hcm_kernel(ids_ref, mask_ref, tt_ref,                 # (TB,S) int32 / f32 / f32
               word_ref, type_ref,                        # (VP,H) bf16, (2,H) f32
               w1_ref, b1_ref, w2_ref, b2_ref,            # (H,H) bf16, (1,H) f32, (H,CP) bf16, (1,CP) f32
               logits_ref):                               # out: (TB,CP) f32
    ids = ids_ref[...]                                    # (TB, S)
    mask = mask_ref[...]                                  # (TB, S) in {0,1}
    tt = tt_ref[...]                                      # (TB, S) in {0,1}
    TB, S = ids.shape
    VP = word_ref.shape[0]

    # --- fused embedding gather + attention-masked sum pool (one MXU matmul) -
    vocab = lax.broadcasted_iota(jnp.int32, (TB, S, VP), 2)
    weighted_onehot = jnp.where(ids[:, :, None] == vocab, mask[:, :, None], 0.0)
    counts = jnp.sum(weighted_onehot, axis=1)             # (TB, VP), exact small ints
    pooled_word = jnp.dot(counts.astype(jnp.bfloat16), word_ref[...],
                          preferred_element_type=jnp.float32)   # (TB, H)

    # token-type embeddings via per-type valid-token counts (tt in {0,1})
    cnt = jnp.sum(mask, axis=1, keepdims=True)            # (TB, 1) valid tokens
    cnt1 = jnp.sum(mask * tt, axis=1, keepdims=True)      # valid tokens of type 1
    cnt0 = cnt - cnt1                                     # valid tokens of type 0
    t0 = type_ref[0:1, :]                                 # (1, H)
    t1 = type_ref[1:2, :]                                 # (1, H)
    pooled = pooled_word + cnt0 * t0 + cnt1 * t1          # masked sum
    pooled = pooled / jnp.maximum(cnt, 1.0)               # masked mean (divide once)

    # --- classification head (dense + gelu, then output projection) ---------
    # Activations kept f32 for the toy so the f32 reference matches to ~1e-6;
    # in production cast pooled/h to bf16 to feed native bf16 MXU operands.
    h = jnp.dot(pooled, w1_ref[...].astype(jnp.float32),
                preferred_element_type=jnp.float32) + b1_ref[...]
    h = jax.nn.gelu(h)
    logits = jnp.dot(h, w2_ref[...].astype(jnp.float32),
                     preferred_element_type=jnp.float32) + b2_ref[...]
    logits_ref[...] = logits.astype(logits_ref.dtype)     # (TB, CP) lane-dense store


# ------------------------------- wrapper ----------------------------------- #
def high_capacity_forward(input_ids, attention_mask, token_type_ids, params,
                          *, batch_tile=128):
    """Returns logits of shape (B, num_classes)."""
    word_emb = params["word_emb"]          # (V, H)  (stored bf16)
    type_emb = params["type_emb"]          # (2, H)
    w1, b1 = params["w1"], params["b1"]    # (H, H) bf16, (1, H)
    w2, b2 = params["w2"], params["b2"]    # (H, C) bf16, (1, C)

    B, S = input_ids.shape
    V, H = word_emb.shape
    C = w2.shape[1]

    # Lane-dense padding: classes (MXU N dim / unmasked vst) and vocab (MXU K
    # dim of the fused gather/pool matmul) both padded up to multiples of 128.
    CP = max(128, pl.cdiv(C, 128) * 128)
    VP = max(128, pl.cdiv(V, 128) * 128)
    wordp = jnp.zeros((VP, H), jnp.bfloat16).at[:V, :].set(word_emb.astype(jnp.bfloat16))
    w2p = jnp.zeros((H, CP), jnp.bfloat16).at[:, :C].set(w2.astype(jnp.bfloat16))
    b2p = jnp.zeros((1, CP), jnp.float32).at[:, :C].set(b2.astype(jnp.float32))
    w1b = w1.astype(jnp.bfloat16)
    b1f = b1.astype(jnp.float32)
    type_f = type_emb.astype(jnp.float32)

    # Batch tiling. Production: TB ~128 (v5e) / 256 (v6e); re-budget for v7x's
    # 64 MiB VMEM. Padded rows gather id 0 with mask 0 -> pooled 0, sliced off.
    TB = min(batch_tile, B)
    Bp = pl.cdiv(B, TB) * TB
    ids = input_ids.astype(jnp.int32)
    mask_f = attention_mask.astype(jnp.float32)
    tt_f = token_type_ids.astype(jnp.float32)
    if Bp != B:
        pad = ((0, Bp - B), (0, 0))
        ids = jnp.pad(ids, pad)
        mask_f = jnp.pad(mask_f, pad)
        tt_f = jnp.pad(tt_f, pad)

    def tile2d():                       # per-grid-step batch tile
        return pl.BlockSpec((TB, S), lambda i: (i, 0))

    def resident(shape):                # constant index_map -> stays VMEM-resident
        return pl.BlockSpec(shape, lambda i: (0,) * len(shape))

    # VMEM budget: resident weights + double-buffered tiles + kernel temporaries.
    resident_bytes = (wordp.size * 2 + type_f.size * 4 + w1b.size * 2
                      + b1f.size * 4 + w2p.size * 2 + b2p.size * 4)
    tile_bytes = TB * S * 4 * 3 + TB * CP * 4
    temp_bytes = TB * S * VP * 4 + TB * (VP + 4 * H + CP) * 4
    vmem_limit = int(min(128 * 1024 * 1024,
                         max(32 * 1024 * 1024,
                             2 * (resident_bytes + 2 * tile_bytes) + temp_bytes)))

    cost = pl.CostEstimate(
        flops=2 * Bp * (VP * H + H * H + H * CP),
        transcendentals=Bp * H,
        bytes_accessed=(ids.size + mask_f.size + tt_f.size) * 4
                       + resident_bytes + Bp * CP * 4,
    )

    grid_spec = pltpu.PrefetchScalarGridSpec(
        num_scalar_prefetch=0,
        grid=(Bp // TB,),
        in_specs=[
            tile2d(),                    # input ids (int32)
            tile2d(),                    # attention mask (f32)
            tile2d(),                    # token type ids (f32)
            resident((VP, H)),           # word embedding table (bf16, VMEM-resident)
            resident((2, H)),            # token-type embedding table
            resident((H, H)),            # head dense weight (bf16)
            resident((1, H)),            # head dense bias
            resident((H, CP)),           # classifier weight (bf16, lane-padded)
            resident((1, CP)),           # classifier bias (lane-padded)
        ],
        out_specs=pl.BlockSpec((TB, CP), lambda i: (i, 0)),
    )

    out = pl.pallas_call(
        hcm_kernel,
        grid_spec=grid_spec,
        out_shape=jax.ShapeDtypeStruct((Bp, CP), jnp.float32),
        compiler_params=pltpu.CompilerParams(
            dimension_semantics=("parallel",),   # batch tiles independent (2 TCs on v7x)
            vmem_limit_bytes=vmem_limit,
        ),
        cost_estimate=cost,
    )(ids, mask_f, tt_f, wordp, type_f, w1b, b1f, w2p, b2p)

    return out[:B, :C]


# --------------------------- pure-JAX reference ---------------------------- #
def reference(input_ids, attention_mask, token_type_ids, params):
    word = jnp.take(params["word_emb"].astype(jnp.float32), input_ids, axis=0)
    typ = jnp.take(params["type_emb"].astype(jnp.float32), token_type_ids, axis=0)
    hidden = word + typ
    m = attention_mask.astype(jnp.float32)
    denom = jnp.maximum(jnp.sum(m, axis=1, keepdims=True), 1.0)
    pooled = jnp.sum(hidden * m[:, :, None], axis=1) / denom
    h = jax.nn.gelu(pooled @ params["w1"].astype(jnp.float32)
                    + params["b1"].astype(jnp.float32))
    return h @ params["w2"].astype(jnp.float32) + params["b2"].astype(jnp.float32)


# --------------------------------- main ------------------------------------ #
if __name__ == "__main__":
    # batch, seq, vocab, hidden, classes (small shapes implied by the module)
    B, S, V, H, C = 16, 16, 64, 128, 4

    key = jax.random.PRNGKey(0)
    ks = jax.random.split(key, 8)
    params = {
        # matmul weights stored bf16 (halved VMEM residency / HBM traffic)
        "word_emb": (jax.random.normal(ks[0], (V, H), jnp.float32) * 0.02).astype(jnp.bfloat16),
        "type_emb": jax.random.normal(ks[1], (2, H), jnp.float32) * 0.02,
        "w1": (jax.random.normal(ks[2], (H, H), jnp.float32) * 0.05).astype(jnp.bfloat16),
        "b1": jax.random.normal(ks[3], (1, H), jnp.float32) * 0.05,
        "w2": (jax.random.normal(ks[4], (H, C), jnp.float32) * 0.05).astype(jnp.bfloat16),
        "b2": jax.random.normal(ks[5], (1, C), jnp.float32) * 0.05,
    }

    input_ids = jax.random.randint(ks[6], (B, S), 0, V, dtype=jnp.int32)
    lengths = jax.random.randint(ks[7], (B, 1), S // 2, S + 1, dtype=jnp.int32)
    attention_mask = (jnp.arange(S, dtype=jnp.int32)[None, :] < lengths).astype(jnp.int32)
    token_type_ids = (jax.random.randint(jax.random.PRNGKey(1), (B, S), 0, 2,
                                         dtype=jnp.int32) * attention_mask)

    # batch_tile=8 -> 2 grid steps so the "parallel" batch axis can feed both
    # TensorCores on v7x even at this toy batch size.
    logits = jax.block_until_ready(
        high_capacity_forward(input_ids, attention_mask, token_type_ids, params,
                              batch_tile=8))

    ref = reference(input_ids, attention_mask, token_type_ids, params)
    assert logits.shape == (B, C), f"bad shape {logits.shape}"
    assert jnp.allclose(logits, ref, atol=1e-3, rtol=1e-3), "logits mismatch"

    print("KERNEL_OK")
</pallas_src>

<mosaic_0001>
module attributes {stable_mosaic.version = 11 : i64} {
  func.func @hcm_kernel(%arg0: i32, %arg1: memref<8x16xi32, #tpu.memory_space<vmem>>, %arg2: memref<8x16xf32, #tpu.memory_space<vmem>>, %arg3: memref<8x16xf32, #tpu.memory_space<vmem>>, %arg4: memref<128x128xbf16, #tpu.memory_space<vmem>>, %arg5: memref<2x128xf32, #tpu.memory_space<vmem>>, %arg6: memref<128x128xbf16, #tpu.memory_space<vmem>>, %arg7: memref<1x128xf32, #tpu.memory_space<vmem>>, %arg8: memref<128x128xbf16, #tpu.memory_space<vmem>>, %arg9: memref<1x128xf32, #tpu.memory_space<vmem>>, %arg10: memref<8x128xf32, #tpu.memory_space<vmem>>) attributes {dimension_semantics = [#tpu.dimension_semantics<parallel>], iteration_bounds = array<i64: 2>, scalar_prefetch = 0 : i64, scratch_operands = 0 : i64, tpu.core_type = #tpu.core_type<tc>, window_params = [{transform_indices = @transform_0, window_bounds = array<i64: 8, 16>}, {transform_indices = @transform_1, window_bounds = array<i64: 8, 16>}, {transform_indices = @transform_2, window_bounds = array<i64: 8, 16>}, {pipeline_mode = #tpu.pipeline_mode<synchronous>, transform_indices = @transform_3, window_bounds = array<i64: 128, 128>}, {pipeline_mode = #tpu.pipeline_mode<synchronous>, transform_indices = @transform_4, window_bounds = array<i64: 2, 128>}, {pipeline_mode = #tpu.pipeline_mode<synchronous>, transform_indices = @transform_5, window_bounds = array<i64: 128, 128>}, {pipeline_mode = #tpu.pipeline_mode<synchronous>, transform_indices = @transform_6, window_bounds = array<i64: 1, 128>}, {pipeline_mode = #tpu.pipeline_mode<synchronous>, transform_indices = @transform_7, window_bounds = array<i64: 128, 128>}, {pipeline_mode = #tpu.pipeline_mode<synchronous>, transform_indices = @transform_8, window_bounds = array<i64: 1, 128>}, {transform_indices = @transform_9, window_bounds = array<i64: 8, 128>}]} {
    %c0 = arith.constant 0 : index
    %c0_0 = arith.constant 0 : index
    %0 = vector.load %arg1[%c0, %c0_0] : memref<8x16xi32, #tpu.memory_space<vmem>>, vector<8x16xi32>
    %c0_1 = arith.constant 0 : index
    %c0_2 = arith.constant 0 : index
    %1 = vector.load %arg2[%c0_1, %c0_2] : memref<8x16xf32, #tpu.memory_space<vmem>>, vector<8x16xf32>
    %c0_3 = arith.constant 0 : index
    %c0_4 = arith.constant 0 : index
    %2 = vector.load %arg3[%c0_3, %c0_4] : memref<8x16xf32, #tpu.memory_space<vmem>>, vector<8x16xf32>
    %3 = tpu.iota {dimensions = array<i32: 2>} : vector<8x16x128xi32>
    %4 = vector.shape_cast %0 : vector<8x16xi32> to vector<8x16x1xi32>
    %5 = vector.broadcast %4 : vector<8x16x1xi32> to vector<8x16x128xi32>
    %6 = arith.cmpi eq, %5, %3 : vector<8x16x128xi32>
    %7 = vector.shape_cast %1 : vector<8x16xf32> to vector<8x16x1xf32>
    %cst = arith.constant 0.000000e+00 : f32
    %8 = vector.shape_cast %7 : vector<8x16x1xf32> to vector<8x16x1xf32>
    %9 = vector.broadcast %8 : vector<8x16x1xf32> to vector<8x16x128xf32>
    %10 = vector.broadcast %cst : f32 to vector<8x16x128xf32>
    %11 = arith.select %6, %9, %10 : vector<8x16x128xi1>, vector<8x16x128xf32>
    %cst_5 = arith.constant dense<0.000000e+00> : vector<8x128xf32>
    %12 = vector.multi_reduction <add>, %11, %cst_5 [1] : vector<8x16x128xf32> to vector<8x128xf32>
    %13 = arith.truncf %12 : vector<8x128xf32> to vector<8x128xbf16>
    %c0_6 = arith.constant 0 : index
    %c0_7 = arith.constant 0 : index
    %14 = vector.load %arg4[%c0_6, %c0_7] : memref<128x128xbf16, #tpu.memory_space<vmem>>, vector<128x128xbf16>
    %cst_8 = arith.constant dense<0.000000e+00> : vector<8x128xf32>
    %15 = tpu.matmul %13, %14, %cst_8 {dimension_numbers = #tpu.dot_dimension_numbers<[1], [0], [0], [1], [0, 0, 1, 1], [], []>} : vector<8x128xbf16>, vector<128x128xbf16>, vector<8x128xf32> -> vector<8x128xf32>
    %cst_9 = arith.constant dense<0.000000e+00> : vector<8xf32>
    %16 = vector.multi_reduction <add>, %1, %cst_9 [1] : vector<8x16xf32> to vector<8xf32>
    %17 = vector.shape_cast %16 : vector<8xf32> to vector<8x1xf32>
    %18 = arith.mulf %1, %2 : vector<8x16xf32>
    %cst_10 = arith.constant dense<0.000000e+00> : vector<8xf32>
    %19 = vector.multi_reduction <add>, %18, %cst_10 [1] : vector<8x16xf32> to vector<8xf32>
    %20 = vector.shape_cast %19 : vector<8xf32> to vector<8x1xf32>
    %21 = arith.subf %17, %20 : vector<8x1xf32>
    %c0_11 = arith.constant 0 : index
    %c0_12 = arith.constant 0 : index
    %22 = vector.load %arg5[%c0_11, %c0_12] : memref<2x128xf32, #tpu.memory_space<vmem>>, vector<1x128xf32>
    %c1 = arith.constant 1 : index
    %c0_13 = arith.constant 0 : index
    %23 = vector.load %arg5[%c1, %c0_13] : memref<2x128xf32, #tpu.memory_space<vmem>>, vector<1x128xf32>
    %24 = vector.broadcast %21 : vector<8x1xf32> to vector<8x128xf32>
    %25 = vector.broadcast %22 : vector<1x128xf32> to vector<8x128xf32>
    %26 = arith.mulf %24, %25 : vector<8x128xf32>
    %27 = arith.addf %15, %26 : vector<8x128xf32>
    %28 = vector.broadcast %20 : vector<8x1xf32> to vector<8x128xf32>
    %29 = vector.broadcast %23 : vector<1x128xf32> to vector<8x128xf32>
    %30 = arith.mulf %28, %29 : vector<8x128xf32>
    %31 = arith.addf %27, %30 : vector<8x128xf32>
    %cst_14 = arith.constant 1.000000e+00 : f32
    %32 = vector.broadcast %cst_14 : f32 to vector<8x1xf32>
    %33 = arith.maximumf %17, %32 : vector<8x1xf32>
    %34 = vector.broadcast %33 : vector<8x1xf32> to vector<8x128xf32>
    %35 = arith.divf %31, %34 : vector<8x128xf32>
    %c0_15 = arith.constant 0 : index
    %c0_16 = arith.constant 0 : index
    %36 = vector.load %arg6[%c0_15, %c0_16] : memref<128x128xbf16, #tpu.memory_space<vmem>>, vector<128x128xbf16>
    %37 = arith.extf %36 : vector<128x128xbf16> to vector<128x128xf32>
    %cst_17 = arith.constant dense<0.000000e+00> : vector<8x128xf32>
    %38 = tpu.matmul %35, %37, %cst_17 {dimension_numbers = #tpu.dot_dimension_numbers<[1], [0], [0], [1], [0, 0, 1, 1], [], []>} : vector<8x128xf32>, vector<128x128xf32>, vector<8x128xf32> -> vector<8x128xf32>
    %c0_18 = arith.constant 0 : index
    %c0_19 = arith.constant 0 : index
    %39 = vector.load %arg7[%c0_18, %c0_19] : memref<1x128xf32, #tpu.memory_space<vmem>>, vector<1x128xf32>
    %40 = vector.broadcast %39 : vector<1x128xf32> to vector<8x128xf32>
    %41 = arith.addf %38, %40 : vector<8x128xf32>
    %42 = arith.mulf %41, %41 : vector<8x128xf32>
    %43 = arith.mulf %41, %42 : vector<8x128xf32>
    %cst_20 = arith.constant 4.471500e-02 : f32
    %44 = vector.broadcast %cst_20 : f32 to vector<8x128xf32>
    %45 = arith.mulf %44, %43 : vector<8x128xf32>
    %46 = arith.addf %41, %45 : vector<8x128xf32>
    %cst_21 = arith.constant 0.797884583 : f32
    %47 = vector.broadcast %cst_21 : f32 to vector<8x128xf32>
    %48 = arith.mulf %47, %46 : vector<8x128xf32>
    %49 = math.tanh %48 : vector<8x128xf32>
    %cst_22 = arith.constant 1.000000e+00 : f32
    %50 = vector.broadcast %cst_22 : f32 to vector<8x128xf32>
    %51 = arith.addf %50, %49 : vector<8x128xf32>
    %cst_23 = arith.constant 5.000000e-01 : f32
    %52 = vector.broadcast %cst_23 : f32 to vector<8x128xf32>
    %53 = arith.mulf %52, %51 : vector<8x128xf32>
    %54 = arith.mulf %41, %53 : vector<8x128xf32>
    %c0_24 = arith.constant 0 : index
    %c0_25 = arith.constant 0 : index
    %55 = vector.load %arg8[%c0_24, %c0_25] : memref<128x128xbf16, #tpu.memory_space<vmem>>, vector<128x128xbf16>
    %56 = arith.extf %55 : vector<128x128xbf16> to vector<128x128xf32>
    %cst_26 = arith.constant dense<0.000000e+00> : vector<8x128xf32>
    %57 = tpu.matmul %54, %56, %cst_26 {dimension_numbers = #tpu.dot_dimension_numbers<[1], [0], [0], [1], [0, 0, 1, 1], [], []>} : vector<8x128xf32>, vector<128x128xf32>, vector<8x128xf32> -> vector<8x128xf32>
    %c0_27 = arith.constant 0 : index
    %c0_28 = arith.constant 0 : index
    %58 = vector.load %arg9[%c0_27, %c0_28] : memref<1x128xf32, #tpu.memory_space<vmem>>, vector<1x128xf32>
    %59 = vector.broadcast %58 : vector<1x128xf32> to vector<8x128xf32>
    %60 = arith.addf %57, %59 : vector<8x128xf32>
    %c0_29 = arith.constant 0 : index
    %c0_30 = arith.constant 0 : index
    %61 = vector.load %arg10[%c0_29, %c0_30] : memref<8x128xf32, #tpu.memory_space<vmem>>, vector<8x128xf32>
    tpu.vector_store %arg10[%c0_29, %c0_30], %60 {strides = array<i32>} : memref<8x128xf32, #tpu.memory_space<vmem>>, vector<8x128xf32>,
    return
  }
  func.func @transform_0(%arg0: i32) -> (i32, i32) {
    %c0_i32 = arith.constant 0 : i32
    %c0_i32_0 = arith.constant 0 : i32
    return %arg0, %c0_i32 : i32, i32
  }
  func.func @transform_1(%arg0: i32) -> (i32, i32) {
    %c0_i32 = arith.constant 0 : i32
    %c0_i32_0 = arith.constant 0 : i32
    return %arg0, %c0_i32 : i32, i32
  }
  func.func @transform_2(%arg0: i32) -> (i32, i32) {
    %c0_i32 = arith.constant 0 : i32
    %c0_i32_0 = arith.constant 0 : i32
    return %arg0, %c0_i32 : i32, i32
  }
  func.func @transform_3(%arg0: i32) -> (i32, i32) {
    %c0_i32 = arith.constant 0 : i32
    %c0_i32_0 = arith.constant 0 : i32
    %c0_i32_1 = arith.constant 0 : i32
    return %c0_i32, %c0_i32_0 : i32, i32
  }
  func.func @transform_4(%arg0: i32) -> (i32, i32) {
    %c0_i32 = arith.constant 0 : i32
    %c0_i32_0 = arith.constant 0 : i32
    %c0_i32_1 = arith.constant 0 : i32
    return %c0_i32, %c0_i32_0 : i32, i32
  }
  func.func @transform_5(%arg0: i32) -> (i32, i32) {
    %c0_i32 = arith.constant 0 : i32
    %c0_i32_0 = arith.constant 0 : i32
    %c0_i32_1 = arith.constant 0 : i32
    return %c0_i32, %c0_i32_0 : i32, i32
  }
  func.func @transform_6(%arg0: i32) -> (i32, i32) {
    %c0_i32 = arith.constant 0 : i32
    %c0_i32_0 = arith.constant 0 : i32
    %c0_i32_1 = arith.constant 0 : i32
    return %c0_i32, %c0_i32_0 : i32, i32
  }
  func.func @transform_7(%arg0: i32) -> (i32, i32) {
    %c0_i32 = arith.constant 0 : i32
    %c0_i32_0 = arith.constant 0 : i32
    %c0_i32_1 = arith.constant 0 : i32
    return %c0_i32, %c0_i32_0 : i32, i32
  }
  func.func @transform_8(%arg0: i32) -> (i32, i32) {
    %c0_i32 = arith.constant 0 : i32
    %c0_i32_0 = arith.constant 0 : i32
    %c0_i32_1 = arith.constant 0 : i32
    return %c0_i32, %c0_i32_0 : i32, i32
  }
  func.func @transform_9(%arg0: i32) -> (i32, i32) {
    %c0_i32 = arith.constant 0 : i32
    %c0_i32_0 = arith.constant 0 : i32
    return %arg0, %c0_i32 : i32, i32
  }
}

</mosaic_0001>

<bundles_post_ra>
// kernel: tpu_custom_call.1
= control target key start
LH: loop header
LB: loop body
LE: loop exit
PB: predicated region body
PF: predicated region fallthrough
CT: control target
= control target key end

     0   :  { %s2422_s0 = inlined_call_operand.hbm [shape: s32[16,16], index: 0, kind: input, shape index: {}]   ;;  %s2423_s1 = inlined_call_operand.hbm [shape: f32[16,16], index: 1, kind: input, shape index: {}]   ;;  %s2424_s2 = inlined_call_operand.hbm [shape: f32[16,16], index: 2, kind: input, shape index: {}]   ;;  %s2425_s3 = inlined_call_operand.hbm [shape: bf16[128,128], index: 3, kind: input, shape index: {}]   ;;  %s2426_s4 = inlined_call_operand.vmem [shape: f32[2,128], index: 4, kind: input, shape index: {}]   ;;  %s2427_s5 = inlined_call_operand.hbm [shape: bf16[128,128], index: 5, kind: input, shape index: {}]   ;;  %s2428_s6 = inlined_call_operand.vmem [shape: f32[1,128], index: 6, kind: input, shape index: {}]   ;;  %s2429_s7 = inlined_call_operand.hbm [shape: bf16[128,128], index: 7, kind: input, shape index: {}]   ;;  %s2430_s8 = inlined_call_operand.vmem [shape: f32[1,128], index: 8, kind: input, shape index: {}]   ;;  %s2431_s9 = inlined_call_operand.hbm [shape: f32[16,128], index: 9, kind: output, shape index: {}]  }
   0x1   :  { %2457 = sst [smem:[#allocation25_spill]] %s2423_s1 }
   0x2   :  { %2458 = sst [smem:[#allocation26_spill]] %s2425_s3 }
   0x3   :  { %2459 = sst [smem:[#allocation27_spill]] %s2430_s8 }
   0x4   :  { %2460 = sst [smem:[#allocation28_spill]] %s2431_s9 }
   0x5   :  { %14 = vsyncpa [#allocation3], 0 }
   0x6   :  { %16 = vsyncpa [#allocation3 + $0x1], 0 }
   0x7   :  { %17 = vsyncpa [#allocation6], 0 }
   0x8   :  { %19 = vsyncpa [#allocation6 + $0x1], 0 }
   0x9   :  { %20 = vsyncpa [#allocation9], 0 }
   0xa   :  { %21 = vsyncpa [#allocation12], 0 }
   0xb   :  { %22 = vsyncpa [#allocation4], 0 }
   0xc   :  { %24 = vsyncpa [#allocation4 + $0x1], 0  ;;  %s2001_s30 = smov 0   ;;  %s2003_s10 = smov 0  }
   0xd   :  { %s2005_s11 = smov 0   ;;  %s2007_s12 = smov 0  }
   0xe LB: > { %2461 = sst [smem:[#allocation19_spill]] %s1925_s30  ;;  %s2022_s13 = sadd.s32 4294967295, %s1937_s12   ;;  %s1937_s12 = sphi %s2007_s12, %s2501_s12   ;;  %s1933_s11 = sphi %s2005_s11, %s2505_s11   ;;  %s1929_s10 = sphi %s2003_s10, %s2504_s10   ;;  %s1925_s30 = sphi %s2001_s30, %s2503_s30  }
   0xf   : > { %2462 = sst [smem:[#allocation20_spill]] %s1937_s12  ;;  %s1286_s14 = sadd.s32 4294967294, %s1937_s12  }
  0x10   : > { %p50_p0 = scmp.ne.s32.totalorder %s1929_s10, %s1925_s30  ;;  %p2432_p1 = scmp.eq.s32.totalorder %s2022_s13, 0 }
  0x11   : > { %p258_p3 = scmp.eq.s32.totalorder %s1286_s14, 1  ;;  %p1287_p5 = scmp.ge.s32.totalorder %s1937_s12, 1 }
  0x12   : > { %p2031_p4 = por %p2432_p1, %p50_p0  ;;  %p265_p7 = scmp.lt.s32.totalorder %s1937_s12, 3 }
  0x13   : > { %p2036_p6 = por %p258_p3, %p50_p0  ;;  %s1939_s18 = smov [#allocation8]  }
  0x14   : > { %s2463_s15 = scalar_select %p2031_p4, 1, 0 }
  0x15   : > { %s2464_s16 = scalar_select %p2036_p6, 1, 0 }
  0x16   : > { %p2041_p8 = pnand %p1287_p5, %p265_p7  ;;  %s277_s19 = sshll.u32 %s1939_s18, 4  ;;  %s2045_s19 = int_to_ptr.vmem [resolvable:$true] %s277_s19 }
  0x17   : > { %2465 = sst [smem:[#allocation21_spill]] %s2464_s16  ;;  %s2057_s21 = sadd.s32 1, %s1937_s12  }
  0x18   : > { %s2466_s17 = scalar_select %p2041_p8, 1, 0 }
  0x19   : > { %p1601_p9 = pneg %p2041_p8  ;;  %2468 = sst [smem:[#allocation22_spill]] %s2057_s21 }
  0x1a   : > { %s37_s22 = sadd.s32 1, %s1933_s11  ;;  %s34_s23 = ssub.s32 %s1937_s12, %s2057_s21 }
  0x1b   : > { %p2052_p11 = pnand %p1601_p9, %p2432_p1  ;;  %s2469_s3 = sld [smem:[#allocation26_spill]] }
  0x1d   : > { %s2467_s20 = scalar_select %p2052_p11, 1, 0 }
  0x1e   : > { %p2070_p13 = pneg %p2052_p11 }
  0x20   : > { %s2470_s29 = scalar_select %p2070_p13, 1, 0 }
  0x21   : > { %s1685_s26 = scalar_lea.hbm %s2469_s3, 1024 }
  0x22   : > { %p1686_p12 = scmp.ne.s32.totalorder %s2469_s3, %s1685_s26  ;;  %p1692_p5 = scmp.lt.u32.totalorder %s1685_s26, %s2469_s3 }
  0x24   : > { %p1688_p0 = pnand %p2070_p13, %p1686_p12 }
  0x26   : > { %p1689_p3 = pneg %p1688_p0 }
  0x28   : > { %p1694_p7 = pnand %p1692_p5, %p1689_p3 }
  0x2a   : > { %1697 = shalt.err (!%p1694_p7)
}
  0x2b   : > { %s1698_s24 = scalar_lea.vmem %s2045_s19, 1024  ;;  %p1706_p2 = scmp.lt.s32.totalorder %s2045_s19, %s2045_s19 }
  0x2c   : > { %p1699_p9 = scmp.ne.s32.totalorder %s2045_s19, %s1698_s24  ;;  %p1707_p6 = scmp.lt.s32.totalorder %s1698_s24, %s1698_s24 }
  0x2e   : > { %p1701_p10 = pnand %p1699_p9, %p2070_p13  ;;  %p1708_p12 = por %p1707_p6, %p1706_p2 }
  0x30   : > { %p1702_p1 = pneg %p1701_p10 }
  0x32   : > { %p1709_p0 = pnand %p1708_p12, %p1702_p1 }
  0x34   : > { %1712 = shalt.err (!%p1709_p0)
}
  0x35   : > { %s2436_s25 = smov 64   ;;  %s2438_s26 = smov 4  }
  0x36   : > { %1604 = dma.hbm_to_vmem [thread:$0]  (!%p2052_p11), %s2469_s3, 1024, %s2045_s19, [#allocation9], %s2436_s25, %s2436_s25, %s2438_s26  }
  0x37   : > { %p35_p1 = scmp.eq.s32.totalorder %s34_s23, 0  ;;  %p44_p2 = scmp.ne.s32.totalorder %s1933_s11, %s1929_s10 }
  0x38   : > { %p45_p6 = scmp.eq.s32.totalorder %s1937_s12, 0  ;;  %p1628_p10 = scmp.lt.s32.totalorder %s1937_s12, 2 }
  0x39   : > { %s2099_s14 = scalar_select %p35_p1, %s1933_s11, %s37_s22  }
  0x3a   : > { %p46_p3 = por %p45_p6, %p44_p2  ;;  %p2472_p5 = scmp.eq.s32.totalorder %s2022_s13, 1 }
  0x3b   : > { %2471 = sst [smem:[#allocation23_spill]] %s2099_s14  ;;  %s2440_s24 = sand.u32 1, %s1933_s11  }
  0x3c   : > { %p2103_p7 = por %p2472_p5, %p44_p2  ;;  %s2109_s21 = sshll.u32 %s1937_s12, 7 }
  0x3d   : > { %s2113_s16 = sshll.u32 %s2440_s24, 3  ;;  %p2115_p9 = pnand %p1628_p10, %p46_p3 }
  0x3e   : > { %s2473_s18 = scalar_select %p2103_p7, 1, 0 }
  0x3f   : > { %s2475_s19 = scalar_select %p2115_p9, 1, 0 }
  0x40   : > { %2474 = sst [smem:[#allocation24_spill]] %s2473_s18  ;;  %s344_s22 = sand.u32 1, %s1937_s12  }
  0x41   : > { %s2476_s1 = sld [smem:[#allocation25_spill]]  ;;  %s348_s25 = scalar_lea.vmem [#allocation5], %s2113_s16 }
  0x42   : > { %s355_s26 = sshll.u32 %s348_s25, 4  ;;  %s2129_s24 = scalar_lea.sflag [#allocation6], %s344_s22  ;;  %s2127_s26 = int_to_ptr.vmem [resolvable:$true] %s355_s26 }
  0x43   : > { %p2135_p0 = pneg %p2115_p9 }
  0x45   : > { %s2477_s14 = scalar_select %p2135_p0, 1, 0 }
  0x47   : > { %s2124_s28 = scalar_lea.hbm %s2476_s1, %s2109_s21  ;;  %s1718_s12 = scalar_lea.hbm %s2476_s1, 256 }
  0x48   : > { %s1713_s3 = scalar_lea.hbm %s2124_s28, 128  ;;  %p1719_p6 = scmp.lt.u32.totalorder %s2124_s28, %s2476_s1 }
  0x49   : > { %p1714_p12 = scmp.ne.s32.totalorder %s2124_s28, %s1713_s3  ;;  %p1720_p10 = scmp.lt.u32.totalorder %s1718_s12, %s1713_s3 }
  0x4a   : > { %p1722_p5 = scmp.lt.u32.totalorder %s1713_s3, %s2124_s28 }
  0x4b   : > { %p1716_p1 = pnand %p2135_p0, %p1714_p12  ;;  %p1721_p3 = por %p1720_p10, %p1719_p6 }
  0x4d   : > { %p1717_p2 = pneg %p1716_p1  ;;  %p1723_p7 = por %p1722_p5, %p1721_p3 }
  0x4f   : > { %p1724_p4 = pnand %p1723_p7, %p1717_p2 }
  0x51   : > { %1727 = shalt.err (!%p1724_p4)
}
  0x52   : > { %s1728_s22 = scalar_lea.vmem %s2127_s26, 128  ;;  %s1942_s23 = smov [#allocation5]  }
  0x53   : > { %p1729_p12 = scmp.ne.s32.totalorder %s2127_s26, %s1728_s22  ;;  %s1733_s27 = sshll.u32 %s1942_s23, 4  ;;  %s1734_s27 = int_to_ptr.vmem [resolvable:$false] %s1733_s27 }
  0x54   : > { %s1735_s30 = scalar_lea.vmem %s1734_s27, 256  ;;  %p1736_p11 = scmp.lt.s32.totalorder %s2127_s26, %s1734_s27 }
  0x55   : > { %p1731_p1 = pnand %p1729_p12, %p2135_p0  ;;  %p1737_p13 = scmp.lt.s32.totalorder %s1735_s30, %s1728_s22 }
  0x57   : > { %p1732_p8 = pneg %p1731_p1  ;;  %p1738_p6 = por %p1737_p13, %p1736_p11 }
  0x59   : > { %p1739_p10 = pnand %p1738_p6, %p1732_p8 }
  0x5b   : > { %1742 = shalt.err (!%p1739_p10)
}
  0x5c   : > { %1617 = dma.hbm_to_vmem [thread:$0]  (!%p2115_p9), %s2124_s28, 128, %s2127_s26, %s2129_s24  }
  0x5d   : > { %s1943_s3 = smov [#allocation10]   ;;  %s1944_s25 = smov [#allocation11]  }
  0x5e   : > { %s293_s12 = sshll.u32 %s1943_s3, 4  ;;  %s309_s1 = sshll.u32 %s1944_s25, 4  ;;  %s294_s12 = int_to_ptr.vmem [resolvable:$true] %s293_s12  ;;  %s310_s1 = int_to_ptr.vmem [resolvable:$true] %s309_s1 }
  0x5f   : > { %s1743_s27 = scalar_lea.hbm %s2427_s5, 1024  ;;  %p2478_p8 = scmp.ne.s32.totalorder %s2470_s29, 0 }
  0x60   : > { %p1744_p4 = scmp.ne.s32.totalorder %s2427_s5, %s1743_s27  ;;  %p1750_p7 = scmp.lt.u32.totalorder %s1743_s27, %s2427_s5 }
  0x62   : > { %p1746_p11 = pnand %p1744_p4, %p2478_p8 }
  0x64   : > { %p1747_p13 = pneg %p1746_p11 }
  0x66   : > { %p1752_p2 = pnand %p1750_p7, %p1747_p13 }
  0x68   : > { %1755 = shalt.err (!%p1752_p2)
}
  0x69   : > { %s1756_s26 = scalar_lea.vmem %s294_s12, 1024  ;;  %p1764_p1 = scmp.lt.s32.totalorder %s294_s12, %s294_s12 }
  0x6a   : > { %p1757_p3 = scmp.ne.s32.totalorder %s294_s12, %s1756_s26  ;;  %p1765_p6 = scmp.lt.s32.totalorder %s1756_s26, %s1756_s26 }
  0x6c   : > { %p1759_p5 = pnand %p1757_p3, %p2478_p8  ;;  %p1766_p10 = por %p1765_p6, %p1764_p1 }
  0x6e   : > { %p1760_p12 = pneg %p1759_p5 }
  0x70   : > { %p1767_p9 = pnand %p1766_p10, %p1760_p12 }
  0x72   : > { %1770 = shalt.err (!%p1767_p9)
}
  0x73   : > { %p2479_p4 = scmp.ne.s32.totalorder %s2467_s20, 0  ;;  %s2480_s9 = smov 4  }
  0x74   : > { %s2481_s28 = smov 64   ;;  %s1771_s23 = scalar_lea.hbm %s2429_s7, 1024 }
  0x75   : > { %1607 = dma.hbm_to_vmem [thread:$0]  (!%p2479_p4), %s2427_s5, 1024, %s294_s12, [#allocation9], %s2481_s28, %s2481_s28, %s2480_s9  }
  0x76   : > { %p1772_p11 = scmp.ne.s32.totalorder %s2429_s7, %s1771_s23  ;;  %p1778_p7 = scmp.lt.u32.totalorder %s1771_s23, %s2429_s7 }
  0x78   : > { %p1774_p9 = pnand %p1772_p11, %p2478_p8 }
  0x7a   : > { %p1775_p13 = pneg %p1774_p9 }
  0x7c   : > { %p1780_p2 = pnand %p1778_p7, %p1775_p13 }
  0x7e   : > { %1783 = shalt.err (!%p1780_p2)
}
  0x7f   : > { %s1784_s8 = scalar_lea.vmem %s310_s1, 1024  ;;  %p1792_p1 = scmp.lt.s32.totalorder %s310_s1, %s310_s1 }
  0x80   : > { %p1785_p3 = scmp.ne.s32.totalorder %s310_s1, %s1784_s8  ;;  %p1793_p6 = scmp.lt.s32.totalorder %s1784_s8, %s1784_s8 }
  0x82   : > { %p1787_p5 = pnand %p1785_p3, %p2478_p8  ;;  %p1794_p10 = por %p1793_p6, %p1792_p1 }
  0x84   : > { %p1788_p12 = pneg %p1787_p5 }
  0x86   : > { %p1795_p0 = pnand %p1794_p10, %p1788_p12 }
  0x88   : > { %1798 = shalt.err (!%p1795_p0)
}
  0x89   : > { %1610 = dma.hbm_to_vmem [thread:$0]  (!%p2479_p4), %s2429_s7, 1024, %s310_s1, [#allocation12], %s2481_s28, %s2481_s28, %s2480_s9  }
  0x8a   : > { %s2205_s25 = scalar_lea.hbm %s2422_s0, %s2109_s21  ;;  %s330_s20 = scalar_lea.vmem [#allocation2], %s2113_s16 }
  0x8b   : > { %s337_s23 = sshll.u32 %s330_s20, 4  ;;  %s2214_s30 = scalar_lea.hbm %s2424_s2, %s2109_s21  ;;  %s2208_s23 = int_to_ptr.vmem [resolvable:$true] %s337_s23 }
  0x8c   : > { %s2482_s26 = sand.u32 1, %s1933_s11   ;;  %s1799_s9 = scalar_lea.hbm %s2205_s25, 128 }
  0x8d   : > { %s327_s1 = scalar_lea.sflag [#allocation3], %s2482_s26  ;;  %p1800_p0 = scmp.ne.s32.totalorder %s2205_s25, %s1799_s9 }
  0x8e   : > { %p2483_p8 = scmp.ne.s32.totalorder %s2477_s14, 0  ;;  %s1804_s12 = scalar_lea.hbm %s2422_s0, 256 }
  0x8f   : > { %p1805_p9 = scmp.lt.u32.totalorder %s2205_s25, %s2422_s0  ;;  %p1806_p13 = scmp.lt.u32.totalorder %s1804_s12, %s1799_s9 }
  0x90   : > { %p1802_p4 = pnand %p1800_p0, %p2483_p8  ;;  %p1808_p2 = scmp.lt.u32.totalorder %s1799_s9, %s2205_s25 }
  0x91   : > { %p1807_p7 = por %p1806_p13, %p1805_p9 }
  0x92   : > { %p1803_p11 = pneg %p1802_p4 }
  0x93   : > { %p1809_p3 = por %p1808_p2, %p1807_p7 }
  0x95   : > { %p1810_p5 = pnand %p1809_p3, %p1803_p11 }
  0x97   : > { %1813 = shalt.err (!%p1810_p5)
}
  0x98   : > { %s1814_s21 = scalar_lea.vmem %s2208_s23, 128  ;;  %s1945_s3 = smov [#allocation2]  }
  0x99   : > { %p1815_p12 = scmp.ne.s32.totalorder %s2208_s23, %s1814_s21  ;;  %s1819_s20 = sshll.u32 %s1945_s3, 4  ;;  %s1820_s20 = int_to_ptr.vmem [resolvable:$false] %s1819_s20 }
  0x9a   : > { %s1821_s27 = scalar_lea.vmem %s1820_s20, 256  ;;  %p1822_p10 = scmp.lt.s32.totalorder %s2208_s23, %s1820_s20 }
  0x9b   : > { %p1817_p1 = pnand %p1815_p12, %p2483_p8  ;;  %p1823_p0 = scmp.lt.s32.totalorder %s1821_s27, %s1814_s21 }
  0x9d   : > { %p1818_p6 = pneg %p1817_p1  ;;  %p1824_p4 = por %p1823_p0, %p1822_p10 }
  0x9f   : > { %p1825_p9 = pnand %p1824_p4, %p1818_p6 }
  0xa1   : > { %1828 = shalt.err (!%p1825_p9)
}
  0xa2   : > { %p2484_p11 = scmp.ne.s32.totalorder %s2475_s19, 0  ;;  %s366_s22 = scalar_lea.vmem [#allocation7], %s2113_s16 }
  0xa3   : > { %s373_s26 = sshll.u32 %s366_s22, 4  ;;  %s1829_s9 = scalar_lea.hbm %s2214_s30, 128  ;;  %s374_s26 = int_to_ptr.vmem [resolvable:$true] %s373_s26 }
  0xa4   : > { %1614 = dma.hbm_to_vmem [thread:$0]  (!%p2484_p11), %s2205_s25, 128, %s2208_s23, %s327_s1  }
  0xa5   : > { %p1830_p13 = scmp.ne.s32.totalorder %s2214_s30, %s1829_s9  ;;  %s1834_s12 = scalar_lea.hbm %s2424_s2, 256 }
  0xa6   : > { %p1835_p3 = scmp.lt.u32.totalorder %s2214_s30, %s2424_s2  ;;  %p1836_p5 = scmp.lt.u32.totalorder %s1834_s12, %s1829_s9 }
  0xa7   : > { %p1832_p7 = pnand %p1830_p13, %p2483_p8  ;;  %p1838_p1 = scmp.lt.u32.totalorder %s1829_s9, %s2214_s30 }
  0xa8   : > { %p1837_p12 = por %p1836_p5, %p1835_p3 }
  0xa9   : > { %p1833_p2 = pneg %p1832_p7 }
  0xaa   : > { %p1839_p6 = por %p1838_p1, %p1837_p12 }
  0xac   : > { %p1840_p10 = pnand %p1839_p6, %p1833_p2 }
  0xae   : > { %1843 = shalt.err (!%p1840_p10)
}
  0xaf   : > { %s1844_s16 = scalar_lea.vmem %s374_s26, 128  ;;  %s1946_s25 = smov [#allocation7]  }
  0xb0   : > { %p1845_p0 = scmp.ne.s32.totalorder %s374_s26, %s1844_s16  ;;  %s1849_s23 = sshll.u32 %s1946_s25, 4  ;;  %s1850_s23 = int_to_ptr.vmem [resolvable:$false] %s1849_s23 }
  0xb1   : > { %s1851_s1 = scalar_lea.vmem %s1850_s23, 256  ;;  %p1852_p13 = scmp.lt.s32.totalorder %s374_s26, %s1850_s23 }
  0xb2   : > { %p1847_p4 = pnand %p1845_p0, %p2483_p8  ;;  %p1853_p7 = scmp.lt.s32.totalorder %s1851_s1, %s1844_s16 }
  0xb4   : > { %p1848_p9 = pneg %p1847_p4  ;;  %p1854_p11 = por %p1853_p7, %p1852_p13 }
  0xb6   : > { %p1855_p3 = pnand %p1854_p11, %p1848_p9 }
  0xb8   : > { %1858 = shalt.err (!%p1855_p3)
}
  0xb9   : > { %p2485_p5 = scmp.ne.s32.totalorder %s2475_s19, 0  ;;  %p2486_p2 = scmp.ne.s32.totalorder %s2466_s17, 0 }
  0xba   : > { %s2261_s14 = sand.u32 (!%p2486_p2), 1, %s1929_s10   ;;  %p2487_p8 = scmp.ne.s32.totalorder (!%p2486_p2), %s2463_s15, 0 }
  0xbb   : > { %1620 = dma.hbm_to_vmem [thread:$0]  (!%p2485_p5), %s2214_s30, 128, %s374_s26, %s2129_s24  }
  0xbc   : > { %382 = sbr.rel (%p2486_p2) target bundleno = 1097 (0x449), region = 56  ;;  %s2264_s21 = sshll.u32 (!%p2486_p2), %s2261_s14, 3 }
  0xbd   : > { %s385_s3 = scalar_lea.sflag (!%p2486_p2), [#allocation3], %s2261_s14  ;;  %s388_s20 = scalar_lea.vmem (!%p2486_p2), [#allocation2], %s2264_s21 }
  0xc3   : > { %1904 = dma.done.wait (%p2487_p8), %s385_s3, 128  }
  0xc4   : > { %1906 = vsyncadd (%p2487_p8), %s385_s3, 4294967168  ;;  %s393_s17 = sand.u32 1, %s2022_s13   ;;  %s397_s19 = scalar_lea.vmem [#allocation5], %s2264_s21 }
  0xc5   : > { %s394_s24 = scalar_lea.sflag [#allocation6], %s393_s17 }
  0xc6   : > { %1908 = dma.done.wait (%p2487_p8), %s394_s24, 256  }
  0xc7   : > { %1910 = vsyncadd (%p2487_p8), %s394_s24, 4294967040  ;;  %s406_s30 = scalar_lea.vmem [#allocation7], %s2264_s21  ;;  %p2488_p11 = scmp.eq.s32.totalorder %s2022_s13, 0 }
  0xc9   : > { %1912 = dma.done.wait (%p2488_p11), [#allocation9], 2048   ;;  %p2489_p12 = pmov %p2488_p11 }
  0xca   : > { %p2490_p1 = pmov %p2488_p11 }
  0xcb   : > { %1914 = vsyncadd (%p2489_p12), [#allocation9], 4294965248 }
  0xcc   : > { %1916 = dma.done.wait (%p2490_p1), [#allocation12], 1024   ;;  %p2491_p6 = pmov %p2490_p1 }
  0xcd   : > { %v467_v0 = vlaneseq  ;;  %v464_v4 = vld [vmem:[%s388_s20] sm:$0xff]  ;;  %v2293_v9 = vld [vmem:[%s397_s19] sm:$0xff]  ;;  %v1947_v23 = vmov 0.0   ;;  %vm1948_vm0 = vmmov 0   ;;  %v1949_v38 = vmov 0.0|0.0   ;;  %s2492_s8 = sld [smem:[#allocation24_spill]] }
  0xce   : > { %1918 = vsyncadd (%p2491_p6), [#allocation12], 4294966272  ;;  %v1673_v22 = vld [vmem:[#allocation8] sm:$0xff]   ;;  %1443 = vmatprep.subr.bf16.mxu0 %v1947_v23  ;;  %v1674_v25 = vld [vmem:[#allocation8 + $0x8] sm:$0xff]   ;;  %1459 = vmatprep.mubr.msk.bf16.mxu0 %vm1948_vm0, %v1947_v23  ;;  %vm757_vm1 = vcmask 130048   ;;  %s2493_s29 = sld [smem:[#allocation27_spill]] }
  0xcf   : > { %v2288_v1 = vshrl.u32 %v467_v0, 7  ;;  %1444 = vmatpush3.bf16.msra.mxu0 %v1673_v22  ;;  %v1675_v28 = vld [vmem:[#allocation8 + $0x10] sm:$0xff]   ;;  %v1676_v30 = vld [vmem:[#allocation8 + $0x18] sm:$0xff]   ;;  %v1677_v32 = vld [vmem:[#allocation8 + $0x20] sm:$0xff]   ;;  %1495 = vmatprep.mubr.msk.f32.mxu1 %vm1948_vm0, %v1947_v23  ;;  %v758_v43 = vsel %vm757_vm1, %v2293_v9, 0.0  ;;  %s1319_s16 = sshll.u32 %s2022_s13, 7 }
  0xd0   : > { %1445 = vmatprep.subr.bf16.mxu0 %v1947_v23  ;;  %v1678_v34 = vld [vmem:[#allocation8 + $0x28] sm:$0xff]   ;;  %v1679_v35 = vld [vmem:[#allocation8 + $0x30] sm:$0xff]   ;;  %v1680_v36 = vld [vmem:[#allocation8 + $0x38] sm:$0xff]   ;;  %1533 = vmatprep.subr.bf16.mxu1 %v1949_v38  ;;  %s462_s25 = scalar_lea.vmem [#allocation13], %s2264_s21  ;;  %s2494_s20 = sld [smem:[#allocation28_spill]] }
  0xd1   : > { %v482_v2 = vsub.s32 1, %v2288_v1  ;;  %v471_v3 = vsub.s32 0, %v2288_v1  ;;  %v493_v5 = vsub.s32 2, %v2288_v1  ;;  %v504_v12 = vsub.s32 3, %v2288_v1  ;;  %v1323_v37 = vld [vmem:[#allocation10] sm:$0xff]   ;;  %v1386_v39 = vld [vmem:[#allocation10 + $0x8] sm:$0xff]  }
  0xd2   : > { %v515_v15 = vsub.s32 4, %v2288_v1  ;;  %v526_v18 = vsub.s32 5, %v2288_v1  ;;  %v537_v21 = vsub.s32 6, %v2288_v1  ;;  %v548_v27 = vsub.s32 7, %v2288_v1  ;;  %1535 = vmatpush3.bf16.msra.mxu1 %v1323_v37  ;;  %v1387_v40 = vld [vmem:[#allocation10 + $0x10] sm:$0xff]   ;;  %v1388_v41 = vld [vmem:[#allocation10 + $0x18] sm:$0xff]  }
  0xd3   : > { %v483_v6 = vrot.slane %v464_v4, %v482_v2  ;;  %v472_v7 = vrot.slane %v464_v4, %v471_v3  ;;  %v494_v8 = vrot.slane %v464_v4, %v493_v5  ;;  %v576_v10 = vrot.slane %v2293_v9, %v471_v3  ;;  %1446 = vmatpush3.bf16.msra.mxu0 %v1674_v25  ;;  %v466_v42 = vld [vmem:[%s406_s30] sm:$0xff]  ;;  %v1389_v46 = vld [vmem:[#allocation10 + $0x20] sm:$0xff]   ;;  %v1390_v47 = vld [vmem:[#allocation10 + $0x28] sm:$0xff]   ;;  %s1144_s23 = sshll.u32 %s462_s25, 4  ;;  %s1131_s24 = scalar_lea.sflag [#allocation4], %s2261_s14  ;;  %s2380_s23 = int_to_ptr.vmem [resolvable:$true] %s1144_s23 }
  0xd4   : > { %v587_v11 = vrot.slane %v2293_v9, %v482_v2  ;;  %v505_v13 = vrot.slane %v464_v4, %v504_v12  ;;  %v598_v14 = vrot.slane %v2293_v9, %v493_v5  ;;  %v516_v16 = vrot.slane %v464_v4, %v515_v15  ;;  %1447 = vmatprep.subr.bf16.mxu0 %v1947_v23  ;;  %s1859_s19 = scalar_lea.vmem %s2380_s23, 128  ;;  %p2495_p0 = scmp.ne.s32.totalorder %s2492_s8, 0 }
  0xd5   : > { %485 = vbcast.lane.b32.xlu1 %v483_v6, 256  ;;  %474 = vbcast.lane.b32.xlu0 %v472_v7, 256  ;;  %v609_v17 = vrot.slane %v2293_v9, %v504_v12  ;;  %v527_v19 = vrot.slane %v464_v4, %v526_v18  ;;  %v620_v20 = vrot.slane %v2293_v9, %v515_v15  ;;  %v2333_v1 = vand.u32 127, %v467_v0  ;;  %p1860_p10 = scmp.ne.s32.totalorder %s2380_s23, %s1859_s19  ;;  %s1950_s13 = smov [#allocation13]  }
  0xd6   : > { %v538_v24 = vrot.slane %v464_v4, %v537_v21  ;;  %v631_v26 = vrot.slane %v2293_v9, %v526_v18  ;;  %v549_v29 = vrot.slane %v464_v4, %v548_v27  ;;  %v642_v31 = vrot.slane %v2293_v9, %v537_v21  ;;  %1536 = vmatprep.subr.bf16.mxu1 %v1949_v38  ;;  %s2378_s17 = scalar_lea.hbm %s2494_s20, %s1319_s16  ;;  %s1863_s21 = sshll.u32 %s1950_s13, 4  ;;  %s1864_s21 = int_to_ptr.vmem [resolvable:$false] %s1863_s21 }
  0xd7   : > { %1448 = vmatpush3.bf16.msra.mxu0 %v1675_v28  ;;  %v653_v33 = vrot.slane %v2293_v9, %v548_v27  ;;  %1538 = vmatpush3.bf16.msra.mxu1 %v1386_v39  ;;  %v761_v44 = vmul.f32 %v466_v42, %v2293_v9  ;;  %p1861_p4 = pnand %p1860_p10, %p2495_p0  ;;  %s1865_s30 = scalar_lea.vmem %s1864_s21, 256 }
  0xd8   : > { %1449 = vmatprep.subr.bf16.mxu0 %v1947_v23  ;;  %1539 = vmatprep.subr.bf16.mxu1 %v1949_v38  ;;  %p1866_p13 = scmp.lt.s32.totalorder %s2380_s23, %s1864_s21  ;;  %p1867_p7 = scmp.lt.s32.totalorder %s1865_s30, %s1859_s19 }
  0xd9   : > { %489 = vbcast.lane.b32.xlu1 %v483_v6, 264  ;;  %478 = vbcast.lane.b32.xlu0 %v472_v7, 264  ;;  %v762_v45 = vsel %vm757_vm1, %v761_v44, 0.0  ;;  %p1862_p9 = pneg %p1861_p4 }
  0xda   : > { %p1868_p3 = por %p1867_p7, %p1866_p13 }
  0xdb   : > { %1450 = vmatpush3.bf16.msra.mxu0 %v1676_v30  ;;  %1541 = vmatpush3.bf16.msra.mxu1 %v1387_v40 }
  0xdc   : > { %1451 = vmatprep.subr.bf16.mxu0 %v1947_v23  ;;  %1542 = vmatprep.subr.bf16.mxu1 %v1949_v38  ;;  %p1869_p5 = pnand %p1868_p3, %p1862_p9 }
  0xdd   : > { %500 = vbcast.lane.b32.xlu1 %v494_v8, 264  ;;  %496 = vbcast.lane.b32.xlu0 %v494_v8, 256 }
  0xdf   : > { %1452 = vmatpush3.bf16.msra.mxu0 %v1677_v32  ;;  %1544 = vmatpush3.bf16.msra.mxu1 %v1388_v41 }
  0xe0   : > { %1453 = vmatprep.subr.bf16.mxu0 %v1947_v23  ;;  %1545 = vmatprep.subr.bf16.mxu1 %v1949_v38 }
  0xe1   : > { %582 = vbcast.lane.b32.xlu1 %v576_v10, 264  ;;  %578 = vbcast.lane.b32.xlu0 %v576_v10, 256 }
  0xe3   : > { %1454 = vmatpush3.bf16.msra.mxu0 %v1678_v34  ;;  %1547 = vmatpush3.bf16.msra.mxu1 %v1389_v46 }
  0xe4   : > { %1455 = vmatprep.subr.bf16.mxu0 %v1947_v23  ;;  %1548 = vmatprep.subr.bf16.mxu1 %v1949_v38 }
  0xe5   : > { %593 = vbcast.lane.b32.xlu1 %v587_v11, 264  ;;  %589 = vbcast.lane.b32.xlu0 %v587_v11, 256 }
  0xe7   : > { %1456 = vmatpush3.bf16.msra.mxu0 %v1679_v35  ;;  %1550 = vmatpush3.bf16.msra.mxu1 %v1390_v47 }
  0xe8   : > { %1457 = vmatprep.subr.bf16.mxu0 %v1947_v23  ;;  %1551 = vmatprep.subr.bf16.mxu1 %v1949_v38 }
  0xe9   : > { %511 = vbcast.lane.b32.xlu1 %v505_v13, 264  ;;  %507 = vbcast.lane.b32.xlu0 %v505_v13, 256 }
  0xeb   : > { %1458 = vmatpush3.bf16.msra.mxu0 %v1680_v36 }
  0xec   : > { %1557 = vmatprep.subr.bf16.mxu0 %v1949_v38 }
  0xed   : > { %604 = vbcast.lane.b32.xlu1 %v598_v14, 264  ;;  %600 = vbcast.lane.b32.xlu0 %v598_v14, 256 }
  0xf1   : > { %522 = vbcast.lane.b32.xlu1 %v516_v16, 264  ;;  %518 = vbcast.lane.b32.xlu0 %v516_v16, 256 }
  0xf5   : > { %615 = vbcast.lane.b32.xlu1 %v609_v17, 264  ;;  %611 = vbcast.lane.b32.xlu0 %v609_v17, 256 }
  0xf9   : > { %533 = vbcast.lane.b32.xlu1 %v527_v19, 264  ;;  %529 = vbcast.lane.b32.xlu0 %v527_v19, 256 }
  0xfd   : > { %626 = vbcast.lane.b32.xlu1 %v620_v20, 264  ;;  %622 = vbcast.lane.b32.xlu0 %v620_v20, 256 }
 0x101   : > { %544 = vbcast.lane.b32.xlu1 %v538_v24, 264  ;;  %540 = vbcast.lane.b32.xlu0 %v538_v24, 256 }
 0x105   : > { %637 = vbcast.lane.b32.xlu1 %v631_v26, 264  ;;  %633 = vbcast.lane.b32.xlu0 %v631_v26, 256 }
 0x109   : > { %555 = vbcast.lane.b32.xlu1 %v549_v29, 264  ;;  %551 = vbcast.lane.b32.xlu0 %v549_v29, 256 }
 0x10d   : > { %648 = vbcast.lane.b32.xlu1 %v642_v31, 264  ;;  %644 = vbcast.lane.b32.xlu0 %v642_v31, 256 }
 0x111   : > { %659 = vbcast.lane.b32.xlu1 %v653_v33, 264  ;;  %655 = vbcast.lane.b32.xlu0 %v653_v33, 256 }
 0x130   : > { %759 = vadd.xlane.f32.xlu0 %v758_v43 }
 0x135   : > { %763 = vadd.xlane.f32.xlu1 %v762_v45 }
 0x147   : > { %v486_v48 = vpop.permute.xlu1 %485  ;;  %v475_v49 = vpop.permute.xlu0 %474 }
 0x148   : > { %vm559_vm2 = vcmp.eq.s32.totalorder %v486_v48, %v2333_v1  ;;  %vm557_vm3 = vcmp.eq.s32.totalorder %v475_v49, %v2333_v1 }
 0x14b   : > { %v490_v50 = vpop.permute.xlu1 %489  ;;  %v479_v51 = vpop.permute.xlu0 %478 }
 0x14c   : > { %vm560_vm4 = vcmp.eq.s32.totalorder %v490_v50, %v2333_v1  ;;  %vm558_vm5 = vcmp.eq.s32.totalorder %v479_v51, %v2333_v1 }
 0x14f   : > { %v501_v52 = vpop.permute.xlu1 %500  ;;  %v497_v53 = vpop.permute.xlu0 %496 }
 0x150   : > { %vm562_vm6 = vcmp.eq.s32.totalorder %v501_v52, %v2333_v1  ;;  %vm561_vm7 = vcmp.eq.s32.totalorder %v497_v53, %v2333_v1 }
 0x153   : > { %v583_v54 = vpop.permute.xlu1 %582  ;;  %v579_v55 = vpop.permute.xlu0 %578 }
 0x154   : > { %v662_v4 = vsel %vm558_vm5, %v583_v54, 0.0  ;;  %v661_v5 = vsel %vm557_vm3, %v579_v55, 0.0  ;;  %vm789_vm3 = vcmask 1041409   ;;  %vm793_vm5 = vcmask 1043459  }
 0x155   : > { %v677_v14 = vadd.f32 %v662_v4, %v661_v5 }
 0x157   : > { %v594_v56 = vpop.permute.xlu1 %593  ;;  %v590_v57 = vpop.permute.xlu0 %589  ;;  %v678_v24 = vrot.slane %v677_v14, 4 }
 0x158   : > { %v664_v6 = vsel %vm560_vm4, %v594_v56, 0.0  ;;  %v663_v7 = vsel %vm559_vm2, %v590_v57, 0.0  ;;  %vm791_vm4 = vcmask 1042434  }
 0x159   : > { %v684_v13 = vadd.f32 %v664_v6, %v663_v7  ;;  %v679_v31 = vadd.f32 %v678_v24, %v677_v14 }
 0x15b   : > { %v512_v58 = vpop.permute.xlu1 %511  ;;  %v508_v59 = vpop.permute.xlu0 %507  ;;  %v685_v21 = vrot.slane %v684_v13, 4  ;;  %v680_v42 = vrot.slane %v679_v31, 2 }
 0x15c   : > { %vm564_vm8 = vcmp.eq.s32.totalorder %v512_v58, %v2333_v1  ;;  %vm563_vm9 = vcmp.eq.s32.totalorder %v508_v59, %v2333_v1 }
 0x15d   : > { %v686_v30 = vadd.f32 %v685_v21, %v684_v13  ;;  %v681_v51 = vadd.f32 %v680_v42, %v679_v31 }
 0x15f   : > { %v605_v60 = vpop.permute.xlu1 %604  ;;  %v601_v61 = vpop.permute.xlu0 %600  ;;  %v687_v40 = vrot.slane %v686_v30, 2 }
 0x160   : > { %v666_v0 = vsel %vm562_vm6, %v605_v60, 0.0  ;;  %v665_v8 = vsel %vm561_vm7, %v601_v61, 0.0  ;;  %vm795_vm6 = vcmask 1044484   ;;  %vm797_vm7 = vcmask 1045509  }
 0x161   : > { %v691_v15 = vadd.f32 %v666_v0, %v665_v8  ;;  %v688_v49 = vadd.f32 %v687_v40, %v686_v30 }
 0x163   : > { %v523_v62 = vpop.permute.xlu1 %522  ;;  %v519_v63 = vpop.permute.xlu0 %518  ;;  %v692_v25 = vrot.slane %v691_v15, 4  ;;  %v689_v60 = vrot.slane %v688_v49, 1 }
 0x164   : > { %vm566_vm10 = vcmp.eq.s32.totalorder %v523_v62, %v2333_v1  ;;  %vm565_vm11 = vcmp.eq.s32.totalorder %v519_v63, %v2333_v1  ;;  %v682_v63 = vrot.slane %v681_v51, 1 }
 0x165   : > { %v693_v32 = vadd.f32 %v692_v25, %v691_v15 }
 0x166   : > { %v683_v14 = vadd.f32 %v682_v63, %v681_v51 }
 0x167   : > { %v616_v2 = vpop.permute.xlu1 %615  ;;  %v612_v3 = vpop.permute.xlu0 %611  ;;  %v694_v43 = vrot.slane %v693_v32, 2 }
 0x168   : > { %v668_v11 = vsel %vm564_vm8, %v616_v2, 0.0  ;;  %v667_v12 = vsel %vm563_vm9, %v612_v3, 0.0  ;;  %v733_v24 = vpack.c.bf16 %v683_v14, %v683_v14  ;;  %vm799_vm8 = vcmask 1046534   ;;  %v1399_v14 = vld [vmem:[#allocation11 + $0x38] sm:$0xff]  }
 0x169   : > { %v698_v16 = vadd.f32 %v668_v11, %v667_v12  ;;  %v695_v52 = vadd.f32 %v694_v43, %v693_v32  ;;  %vm801_vm9 = vcmask 1047559  }
 0x16b   : > { %v534_v9 = vpop.permute.xlu1 %533  ;;  %v530_v10 = vpop.permute.xlu0 %529  ;;  %v699_v26 = vrot.slane %v698_v16, 4  ;;  %v696_v2 = vrot.slane %v695_v52, 1 }
 0x16c   : > { %vm568_vm12 = vcmp.eq.s32.totalorder %v534_v9, %v2333_v1  ;;  %vm567_vm13 = vcmp.eq.s32.totalorder %v530_v10, %v2333_v1  ;;  %v690_v9 = vadd.f32 %v689_v60, %v688_v49  ;;  %v1306_v60 = vld [vmem:[%s2426_s4] ss:$0 sm:$0xff] }
 0x16d   : > { %v700_v33 = vadd.f32 %v699_v26, %v698_v16  ;;  %v697_v13 = vadd.f32 %v696_v2, %v695_v52 }
 0x16f   : > { %v627_v17 = vpop.permute.xlu1 %626  ;;  %v623_v18 = vpop.permute.xlu0 %622  ;;  %v701_v44 = vrot.slane %v700_v33, 2 }
 0x170   : > { %v670_v19 = vsel %vm566_vm10, %v627_v17, 0.0  ;;  %v669_v20 = vsel %vm565_vm11, %v623_v18, 0.0 }
 0x171   : > { %v705_v22 = vadd.f32 %v670_v19, %v669_v20  ;;  %v702_v53 = vadd.f32 %v701_v44, %v700_v33  ;;  %v734_v19 = vpack.c.bf16 %v690_v9, %v690_v9  ;;  %v1394_v9 = vld [vmem:[#allocation11 + $0x10] sm:$0xff]  }
 0x173   : > { %v545_v27 = vpop.permute.xlu1 %544  ;;  %v541_v28 = vpop.permute.xlu0 %540  ;;  %v706_v29 = vrot.slane %v705_v22, 4  ;;  %v703_v3 = vrot.slane %v702_v53, 1 }
 0x174   : > { %vm570_vm14 = vcmp.eq.s32.totalorder %v545_v27, %v2333_v1  ;;  %vm569_vm15 = vcmp.eq.s32.totalorder %v541_v28, %v2333_v1 }
 0x175   : > { %v707_v36 = vadd.f32 %v706_v29, %v705_v22  ;;  %v704_v15 = vadd.f32 %v703_v3, %v702_v53  ;;  %v735_v22 = vpack.c.bf16 %v697_v13, %v697_v13  ;;  %v782_v29 = vunpack.c.l.b16 %v734_v19  ;;  %v1391_v53 = vld [vmem:[#allocation10 + $0x30] sm:$0xff]  }
 0x176   : > { %1553 = vmatpush3.bf16.msra.mxu1 %v1391_v53  ;;  %v1398_v13 = vld [vmem:[#allocation11 + $0x30] sm:$0xff]  }
 0x177   : > { %v638_v34 = vpop.permute.xlu1 %637  ;;  %v634_v35 = vpop.permute.xlu0 %633  ;;  %v708_v48 = vrot.slane %v707_v36, 2  ;;  %v736_v25 = vpack.c.bf16 %v704_v15, %v704_v15  ;;  %v783_v33 = vunpack.c.l.b16 %v735_v22  ;;  %1554 = vmatprep.subr.bf16.mxu1 %v1949_v38  ;;  %v1316_v15 = vld [vmem:[%s2428_s6] ss:$0 sm:$0xff] }
 0x178   : > { %v672_v37 = vsel %vm568_vm12, %v638_v34, 0.0  ;;  %v671_v39 = vsel %vm567_vm13, %v634_v35, 0.0  ;;  %v781_v34 = vunpack.c.l.b16 %v733_v24 }
 0x179   : > { %v712_v41 = vadd.f32 %v672_v37, %v671_v39  ;;  %v709_v57 = vadd.f32 %v708_v48, %v707_v36  ;;  %v784_v35 = vunpack.c.l.b16 %v736_v25 }
 0x17a   : > { %v790_v40 = vsel %vm789_vm3, %v782_v29, %v781_v34 }
 0x17b   : > { %v713_v45 = vrot.slane %v712_v41, 4  ;;  %v556_v46 = vpop.permute.xlu1 %555  ;;  %v552_v47 = vpop.permute.xlu0 %551  ;;  %v710_v7 = vrot.slane %v709_v57, 1  ;;  %v792_v43 = vsel %vm791_vm4, %v783_v33, %v790_v40 }
 0x17c   : > { %vm572_vm1 = vcmp.eq.s32.totalorder %v556_v46, %v2333_v1  ;;  %vm571_vm2 = vcmp.eq.s32.totalorder %v552_v47, %v2333_v1 }
 0x17d   : > { %v714_v50 = vadd.f32 %v713_v45, %v712_v41  ;;  %v711_v18 = vadd.f32 %v710_v7, %v709_v57  ;;  %v794_v45 = vsel %vm793_vm5, %v784_v35, %v792_v43 }
 0x17f   : > { %v715_v54 = vrot.slane %v714_v50, 2  ;;  %v649_v55 = vpop.permute.xlu1 %648  ;;  %v645_v56 = vpop.permute.xlu0 %644  ;;  %v737_v28 = vpack.c.bf16 %v711_v18, %v711_v18 }
 0x180   : > { %v674_v58 = vsel %vm570_vm14, %v649_v55, 0.0  ;;  %v673_v59 = vsel %vm569_vm15, %v645_v56, 0.0  ;;  %v1355_v55 = vld [vmem:[#allocation11] sm:$0xff]  }
 0x181   : > { %v716_v61 = vadd.f32 %v715_v54, %v714_v50  ;;  %v719_v62 = vadd.f32 %v674_v58, %v673_v59  ;;  %v785_v39 = vunpack.c.l.b16 %v737_v28  ;;  %v1392_v54 = vld [vmem:[#allocation10 + $0x38] sm:$0xff]  }
 0x182   : > { %1556 = vmatpush3.bf16.msra.mxu1 %v1392_v54 }
 0x183   : > { %v720_v4 = vrot.slane %v719_v62, 4  ;;  %v660_v5 = vpop.permute.xlu1 %659  ;;  %v656_v6 = vpop.permute.xlu0 %655  ;;  %v717_v10 = vrot.slane %v716_v61, 1  ;;  %v796_v47 = vsel %vm795_vm6, %v785_v39, %v794_v45 }
 0x184   : > { %v676_v0 = vsel %vm572_vm1, %v660_v5, 0.0  ;;  %v675_v8 = vsel %vm571_vm2, %v656_v6, 0.0 }
 0x185   : > { %v721_v11 = vadd.f32 %v720_v4, %v719_v62  ;;  %v726_v12 = vadd.f32 %v676_v0, %v675_v8  ;;  %v718_v20 = vadd.f32 %v717_v10, %v716_v61  ;;  %v1393_v8 = vld [vmem:[#allocation11 + $0x8] sm:$0xff]   ;;  %v1395_v10 = vld [vmem:[#allocation11 + $0x18] sm:$0xff]  }
 0x187   : > { %v722_v16 = vrot.slane %v721_v11, 2  ;;  %v727_v17 = vrot.slane %v726_v12, 4  ;;  %v738_v30 = vpack.c.bf16 %v718_v20, %v718_v20 }
 0x189   : > { %v723_v21 = vadd.f32 %v722_v16, %v721_v11  ;;  %v728_v1 = vadd.f32 %v727_v17, %v726_v12  ;;  %v786_v41 = vunpack.c.l.b16 %v738_v30  ;;  %v1396_v11 = vld [vmem:[#allocation11 + $0x20] sm:$0xff]   ;;  %v1397_v12 = vld [vmem:[#allocation11 + $0x28] sm:$0xff]  }
 0x18b   : > { %v724_v26 = vrot.slane %v723_v21, 1  ;;  %v729_v27 = vrot.slane %v728_v1, 2  ;;  %v798_v49 = vsel %vm797_vm7, %v786_v41, %v796_v47 }
 0x18d   : > { %v725_v31 = vadd.f32 %v724_v26, %v723_v21  ;;  %v730_v32 = vadd.f32 %v729_v27, %v728_v1  ;;  %v1317_v27 = vld [vmem:[%s2493_s29] ss:$0 sm:$0xff] }
 0x18f   : > { %v739_v36 = vpack.c.bf16 %v725_v31, %v725_v31  ;;  %v731_v37 = vrot.slane %v730_v32, 1 }
 0x191   : > { %v732_v42 = vadd.f32 %v731_v37, %v730_v32  ;;  %v787_v44 = vunpack.c.l.b16 %v739_v36 }
 0x193   : > { %v740_v46 = vpack.c.bf16 %v732_v42, %v732_v42  ;;  %v800_v50 = vsel %vm799_vm8, %v787_v44, %v798_v49 }
 0x195   : > { %v788_v48 = vunpack.c.l.b16 %v740_v46 }
 0x197   : > { %v802_v51 = vsel %vm801_vm9, %v788_v48, %v800_v50 }
 0x198   : > { %v803_v52 = vpack.c.b16 %v802_v51, %v802_v51 }
 0x19a   : > { %1460 = vmatmul.mubr.bf16.vlgmr.msra.gmra.mrb[0].mxu0 %v803_v52 }
 0x19b   : > { %1530 = vmatprep.mubr.msk.f32.mxu0 %vm1948_vm0, %v1947_v23  ;;  %1559 = vmatpush3.bf16.msra.mxu0 %v1355_v55  ;;  %v1315_v23 = vld [vmem:[%s2426_s4 + $0x1] ss:$0 sm:$0xff] }
 0x19c   : > { %1560 = vmatprep.subr.bf16.mxu0 %v1949_v38 }
 0x19f   : > { %1562 = vmatpush3.bf16.msra.mxu0 %v1393_v8 }
 0x1a0   : > { %1563 = vmatprep.subr.bf16.mxu0 %v1949_v38 }
 0x1a3   : > { %1565 = vmatpush3.bf16.msra.mxu0 %v1394_v9 }
 0x1a4   : > { %1566 = vmatprep.subr.bf16.mxu0 %v1949_v38 }
 0x1a7   : > { %1568 = vmatpush3.bf16.msra.mxu0 %v1395_v10 }
 0x1a8   : > { %1569 = vmatprep.subr.bf16.mxu0 %v1949_v38 }
 0x1ab   : > { %1571 = vmatpush3.bf16.msra.mxu0 %v1396_v11 }
 0x1ac   : > { %1572 = vmatprep.subr.bf16.mxu0 %v1949_v38 }
 0x1af   : > { %1574 = vmatpush3.bf16.msra.mxu0 %v1397_v12 }
 0x1b0   : > { %1575 = vmatprep.subr.bf16.mxu0 %v1949_v38 }
 0x1b3   : > { %1577 = vmatpush3.bf16.msra.mxu0 %v1398_v13 }
 0x1b4   : > { %1578 = vmatprep.subr.bf16.mxu0 %v1949_v38 }
 0x1b7   : > { %1580 = vmatpush3.bf16.msra.mxu0 %v1399_v14 }
 0x1bd   : > { %v760_v56 = vpop.xlane.xlu0 %759 }
 0x1be   : > { %v899_v57 = vmax.f32 %v760_v56, 1.0 }
 0x1c0   : > { %1681 = vrcp.f32 %v899_v57 }
 0x1c2   : > { %v764_v58 = vpop.xlane.xlu1 %763 }
 0x1c3   : > { %v765_v59 = vsub.f32 %v760_v56, %v764_v58  ;;  %v897_v63 = vmul.f32 %v1315_v23, %v764_v58 }
 0x1c5   : > { %v772_v61 = vmul.f32 %v1306_v60, %v765_v59 }
 0x1ca   : > { %v1682_v4 = vpop.eup %1681 }
 0x26d   : > { %v887_v62 = vpop.f32.mrb[0].mxu0 }
 0x26e   : > { %v888_v2 = vadd.f32 %v887_v62, %v772_v61  ;;  %v1461_v3 = vpop.f32.mrb[1].mxu0 }
 0x26f   : > { %v890_v5 = vpop.f32.mrb[2].mxu0 }
 0x270   : > { %v898_v6 = vadd.f32 %v897_v63, %v888_v2  ;;  %v1462_v7 = vpop.f32.mrb[3].mxu0 }
 0x272   : > { %v901_v0 = vmul.f32 %v1682_v4, %v898_v6 }
 0x274   : > { %1496 = vmatmul.mubr.f32.vlgmr.msra.gmra.mrb[0].mxu1 %v901_v0 }
 0x347   : > { %v1007_v16 = vpop.f32.mrb[0].mxu1 }
 0x348   : > { %v1008_v17 = vadd.f32 %v1316_v15, %v1007_v16  ;;  %v1497_v18 = vpop.f32.mrb[1].mxu1 }
 0x34a   : > { %v1011_v19 = vmul.f32 %v1008_v17, %v1008_v17 }
 0x34c   : > { %v1012_v20 = vmul.f32 %v1011_v19, %v1008_v17 }
 0x34e   : > { %v1013_v21 = vmul.f32 0.044715, %v1012_v20 }
 0x350   : > { %v1014_v1 = vadd.f32 %v1013_v21, %v1008_v17 }
 0x352   : > { %v1015_v22 = vmul.f32 0.7978846, %v1014_v1 }
 0x354   : > { %1683 = vtanh.f32 %v1015_v22 }
 0x35e   : > { %v1684_v24 = vpop.eup %1683 }
 0x35f   : > { %v1017_v38 = vadd.f32 1.0, %v1684_v24 }
 0x361   : > { %v1018_v25 = vmul.f32 0.5, %v1017_v38 }
 0x363   : > { %v1019_v26 = vmul.f32 %v1018_v25, %v1008_v17 }
 0x365   : > { %1531 = vmatmul.mubr.f32.vlgmr.msra.gmra.mrb[4].mxu0 %v1019_v26 }
 0x438   : > { %v1125_v28 = vpop.f32.mrb[4].mxu0 }
 0x439   : > { %v1126_v29 = vadd.f32 %v1317_v27, %v1125_v28  ;;  %v1532_v30 = vpop.f32.mrb[5].mxu0 }
 0x43b   : > { %1129 = vst [vmem:[%s462_s25] sm:$0xff] %v1126_v29 }
 0x43c   : > { %1872 = shalt.err (!%p1869_p5)
}
 0x43d   : > { %s1873_s14 = scalar_lea.hbm %s2378_s17, 128  ;;  %s1877_s22 = scalar_lea.hbm %s2494_s20, 256 }
 0x43e   : > { %p1874_p2 = scmp.ne.s32.totalorder %s2378_s17, %s1873_s14  ;;  %p1878_p12 = scmp.lt.u32.totalorder %s2378_s17, %s2494_s20 }
 0x43f   : > { %p1879_p1 = scmp.lt.u32.totalorder %s1877_s22, %s1873_s14  ;;  %p1881_p10 = scmp.lt.u32.totalorder %s1873_s14, %s2378_s17 }
 0x440   : > { %p1875_p8 = pnand %p1874_p2, %p2495_p0 }
 0x441   : > { %p1880_p6 = por %p1879_p1, %p1878_p12 }
 0x442   : > { %p1876_p11 = pneg %p1875_p8 }
 0x443   : > { %p1882_p4 = por %p1881_p10, %p1880_p6 }
 0x445   : > { %p1883_p9 = pnand %p1882_p4, %p1876_p11 }
 0x447   : > { %1886 = shalt.err (!%p1883_p9)
}
 0x448   : > { %1599 = dma.vmem_to_hbm [thread:$0]  (%p2495_p0), %s2380_s23, 128, %s2378_s17, %s1131_s24  }
 0x449 PF: > { %s2496_s28 = sld [smem:[#allocation19_spill]]  ;;  %s2497_s12 = sld [smem:[#allocation21_spill]] }
 0x44a   : > { %s2498_s18 = sld [smem:[#allocation20_spill]] }
 0x44f   : > { %s1156_s29 = sand.u32 1, %s2496_s28   ;;  %p2499_p13 = scmp.ne.s32.totalorder %s2497_s12, 0 }
 0x450   : > { %p2500_p7 = scmp.ge.s32.totalorder %s2498_s18, 2  ;;  %s1157_s16 = scalar_lea.sflag [#allocation4], %s1156_s29 }
 0x452   : > { %p1622_p3 = pnand %p2500_p7, %p2499_p13 }
 0x454   : > { %1920 = dma.done.wait (!%p1622_p3), %s1157_s16, 128  }
 0x455   : > { %1922 = vsyncadd (!%p1622_p3), %s1157_s16, 4294967168  ;;  %s2501_s12 = sld [smem:[#allocation22_spill]]  ;;  %s2502_s25 = sld [smem:[#allocation23_spill]] }
 0x456   : > { %s2503_s30 = smov %s1929_s10  ;;  %s2504_s10 = smov %s1933_s11 }
 0x45b   : > { %p27_p5 = scmp.ge.s32.totalorder %s2501_s12, 4   ;;  %s2505_s11 = smov %s2502_s25 }
 0x45d   :  { %29 = sbr.rel (!%p27_p5) target bundleno = 14 (0xe), region = 137 }
 0x464   :  { %1162 = vsyncpa [#allocation3], 1 }
 0x465   :  { %1164 = vsyncpa [#allocation3 + $0x1], 1 }
 0x466   :  { %1165 = vsyncpa [#allocation6], 1 }
 0x467   :  { %1167 = vsyncpa [#allocation6 + $0x1], 1 }
 0x468   :  { %1168 = vsyncpa [#allocation9], 1 }
 0x469   :  { %1169 = vsyncpa [#allocation12], 1 }
 0x46a   :  { %1170 = vsyncpa [#allocation4], 1 }
 0x46b   :  { %1172 = vsyncpa [#allocation4 + $0x1], 1 }

</bundles_post_ra>
